<compile_context>
chip_gen: v7x
topology: tpu7x:2x2x1
jax: 0.10.0
libtpu: 0.0.40
codegen_flags: <defaults>
</compile_context>

<pallas_src>
import jax
import jax.numpy as jnp
from jax.experimental import pallas as pl
from jax.experimental.pallas import tpu as pltpu


def _round_up(x, m):
    return ((x + m - 1) // m) * m


def _make_output_fc_kernel(num_hidden, batch, d_in):
    """Builds the kernel body for `num_hidden` hidden (Linear+PReLU+Dropout) layers."""

    def kernel(alpha_ref, x_ref, *refs):
        """One grid step: a (ts, B*Din) row slab -> a (B, ts, Dout) output tile.

        alpha_ref : (num_hidden,) f32 (SMEM)  PReLU slopes
        x_ref     : (ts, B*Din)  bf16         ts sequence positions, all batches
        refs      : w0, b0, ..., w_{L-1}, b_{L-1}, wf, bf, o_ref
                    w*: (in, out) bf16 resident weights; b*: (1, out) f32
        o_ref     : (B, ts, Dout) f32         output already in (batch, seq, d) order
        """
        *wb_refs, o_ref = refs
        # Hoist all resident weight/bias loads out of the batch unroll.
        wbs = [r[...] for r in wb_refs]
        alphas = [alpha_ref[l] for l in range(num_hidden)]

        # Static unroll over batch (batch is the small dim; seq carries the tile size).
        for b in range(batch):
            h = x_ref[:, b * d_in:(b + 1) * d_in]      # (ts, d_in) bf16 lane slice
            for l in range(num_hidden):
                w = wbs[2 * l]
                bia = wbs[2 * l + 1]
                # Linear (bf16 MXU inputs, f32 accumulate) + PReLU (f32 VPU)
                h = jnp.dot(h, w, preferred_element_type=jnp.float32) + bia
                h = jnp.where(h > 0, h, alphas[l] * h)
                # TODO(synk): nn.Dropout is identity at inference; training-mode
                # dropout (Bernoulli masking + 1/(1-p) scaling) omitted.
                h = h.astype(w.dtype)
            wf = wbs[2 * num_hidden]
            bf = wbs[2 * num_hidden + 1]
            # Final Linear, stored straight into the permuted (batch, seq, d_out) slot.
            y = jnp.dot(h, wf, preferred_element_type=jnp.float32) + bf
            # TODO(synk): Dout < 128 lanes -> masked stores; a lane-dense output
            # repack could be added if stores ever show up as the bottleneck.
            o_ref[b, :, :] = y.astype(o_ref.dtype)

    return kernel


def _pick_seq_tile(requested, S, B, Din, Dout, vmem_budget_bytes=8 << 20):
    """Large seq tile, 16-aligned (bf16 sublane packing), capped by a VMEM budget
    for the double-buffered streamed operands (x tile bf16 + out tile f32)."""
    ts = max(16, _round_up(min(requested, _round_up(S, 16)), 16))

    def stream_bytes(t):
        return 2 * (t * B * Din * 2) + 2 * (B * t * Dout * 4)

    while ts > 16 and stream_bytes(ts) > vmem_budget_bytes:
        ts = max(16, _round_up(ts // 2, 16))
    return ts


def output_fc(x, params, *, seq_tile=512):
    """x: (seq, batch, d_input) float -> (batch, seq, d_output) float32.

    params = [(w0, b0, a0), ..., (w_{L-1}, b_{L-1}, a_{L-1}), (wf, bf)]
    with Linear weights stored transposed as (in, out), bias (1, out),
    PReLU slope a scalar.
    """
    S, B, Din = x.shape
    hidden = params[:-1]
    wf, bf = params[-1]
    num_hidden = len(hidden)
    Dout = wf.shape[1]

    # ---- tiling: large seq tile, pad S to fit ----
    ts = _pick_seq_tile(seq_tile, S, B, Din, Dout)
    S_p = _round_up(S, ts)
    if S_p != S:
        x = jnp.pad(x, ((0, S_p - S), (0, 0), (0, 0)))

    # bf16 streaming operands (f32 accumulation on the MXU); biases / slopes stay f32.
    x2 = x.astype(jnp.bfloat16).reshape(S_p, B * Din)

    wb_args = []
    wb_specs = []
    for (w, b, _a) in hidden:
        h_out = w.shape[1]
        wb_args.append(w.astype(jnp.bfloat16))
        wb_specs.append(pl.BlockSpec(w.shape, lambda i: (0, 0)))
        wb_args.append(b.reshape(1, h_out).astype(jnp.float32))
        wb_specs.append(pl.BlockSpec((1, h_out), lambda i: (0, 0)))
    wb_args.append(wf.astype(jnp.bfloat16))
    wb_specs.append(pl.BlockSpec(wf.shape, lambda i: (0, 0)))
    wb_args.append(bf.reshape(1, Dout).astype(jnp.float32))
    wb_specs.append(pl.BlockSpec((1, Dout), lambda i: (0, 0)))

    alpha_list = [jnp.asarray(a, jnp.float32).reshape(()) for (_w, _b, a) in hidden]
    if not alpha_list:  # layers=[] -> dummy slot, never read by the kernel
        alpha_list = [jnp.float32(0.0)]
    alphas = jnp.stack(alpha_list)

    grid = (S_p // ts,)
    kernel = _make_output_fc_kernel(num_hidden, B, Din)

    y = pl.pallas_call(
        kernel,
        out_shape=jax.ShapeDtypeStruct((B, S_p, Dout), jnp.float32),
        grid_spec=pltpu.PrefetchScalarGridSpec(
            num_scalar_prefetch=0,
            grid=grid,
            in_specs=[
                pl.BlockSpec(memory_space=pltpu.MemorySpace.SMEM),  # PReLU slopes
                pl.BlockSpec((ts, B * Din), lambda i: (i, 0)),      # x row slab (streamed)
            ] + wb_specs,                                           # resident weights/biases
            # Output written directly in (batch, seq, d_out) order -> permute fused.
            out_specs=pl.BlockSpec((B, ts, Dout), lambda i: (0, i, 0)),
        ),
        compiler_params=pltpu.CompilerParams(
            dimension_semantics=("parallel",)),
    )(alphas, x2, *wb_args)

    return y[:, :S, :] if S_p != S else y


def init_params(key, d_input, layers, d_output):
    """Deterministic param init mirroring the module's shapes.
    Linear weights stored transposed: (in, out). Bias: (1, out).
    PReLU param init = 0.25 (PyTorch default), stored as a scalar."""
    params = []
    in_c = d_input
    keys = jax.random.split(key, 2 * (len(layers) + 1))
    k = 0
    for h in layers:
        scale = 1.0 / jnp.sqrt(in_c)
        w = jax.random.uniform(keys[k], (in_c, h), jnp.float32, -scale, scale); k += 1
        b = jax.random.uniform(keys[k], (1, h), jnp.float32, -scale, scale); k += 1
        a = jnp.full((), 0.25, jnp.float32)
        params.append((w, b, a))
        in_c = h
    scale = 1.0 / jnp.sqrt(in_c)
    wf = jax.random.uniform(keys[k], (in_c, d_output), jnp.float32, -scale, scale); k += 1
    bf = jax.random.uniform(keys[k], (1, d_output), jnp.float32, -scale, scale)
    params.append((wf, bf))
    return params


def output_fc_ref(x, params, *, low_precision=True):
    """Pure-JAX reference. With low_precision=True it applies the same bf16 casts
    as the kernel (f32 accumulation), so tolerances can stay tight."""
    hidden = params[:-1]
    wf, bf = params[-1]
    cast = (lambda t: t.astype(jnp.bfloat16)) if low_precision else (lambda t: t)
    h = x
    for (w, b, a) in hidden:
        h = jnp.dot(cast(h), cast(w), preferred_element_type=jnp.float32) + b
        h = jnp.where(h > 0, h, a * h)
    y = jnp.dot(cast(h), cast(wf), preferred_element_type=jnp.float32) + bf
    return y.transpose(1, 0, 2)


if __name__ == "__main__":
    # Small shapes consistent with the module; seq not a multiple of the tile to
    # exercise the pad-and-slice path.
    seq_len, batch, d_input, d_output = 12, 2, 32, 16
    layers = [64, 32]

    key = jax.random.PRNGKey(0)
    kx, kp = jax.random.split(key)
    x = jax.random.normal(kx, (seq_len, batch, d_input), jnp.float32)
    params = init_params(kp, d_input, layers, d_output)

    y = output_fc(x, params)
    y = jax.block_until_ready(y)

    y_ref = output_fc_ref(x, params)           # bf16-matched reference
    assert y.shape == (batch, seq_len, d_output)
    assert jnp.allclose(y, y_ref, atol=2e-2, rtol=2e-2)

    print("KERNEL_OK")
</pallas_src>

<mosaic_0001>
module attributes {stable_mosaic.version = 11 : i64} {
  func.func @kernel(%arg0: i32, %arg1: memref<2xf32, #tpu.memory_space<smem>>, %arg2: memref<16x64xbf16, #tpu.memory_space<vmem>>, %arg3: memref<32x64xbf16, #tpu.memory_space<vmem>>, %arg4: memref<1x64xf32, #tpu.memory_space<vmem>>, %arg5: memref<64x32xbf16, #tpu.memory_space<vmem>>, %arg6: memref<1x32xf32, #tpu.memory_space<vmem>>, %arg7: memref<32x16xbf16, #tpu.memory_space<vmem>>, %arg8: memref<1x16xf32, #tpu.memory_space<vmem>>, %arg9: memref<2x16x16xf32, #tpu.memory_space<vmem>>) attributes {dimension_semantics = [#tpu.dimension_semantics<parallel>], iteration_bounds = array<i64: 1>, scalar_prefetch = 0 : i64, scratch_operands = 0 : i64, tpu.core_type = #tpu.core_type<tc>, window_params = [{transform_indices = @transform_0, window_bounds = array<i64: 2>}, {transform_indices = @transform_1, window_bounds = array<i64: 16, 64>}, {pipeline_mode = #tpu.pipeline_mode<synchronous>, transform_indices = @transform_2, window_bounds = array<i64: 32, 64>}, {pipeline_mode = #tpu.pipeline_mode<synchronous>, transform_indices = @transform_3, window_bounds = array<i64: 1, 64>}, {pipeline_mode = #tpu.pipeline_mode<synchronous>, transform_indices = @transform_4, window_bounds = array<i64: 64, 32>}, {pipeline_mode = #tpu.pipeline_mode<synchronous>, transform_indices = @transform_5, window_bounds = array<i64: 1, 32>}, {pipeline_mode = #tpu.pipeline_mode<synchronous>, transform_indices = @transform_6, window_bounds = array<i64: 32, 16>}, {pipeline_mode = #tpu.pipeline_mode<synchronous>, transform_indices = @transform_7, window_bounds = array<i64: 1, 16>}, {transform_indices = @transform_8, window_bounds = array<i64: 2, 16, 16>}]} {
    %c0 = arith.constant 0 : index
    %c0_0 = arith.constant 0 : index
    %0 = vector.load %arg3[%c0, %c0_0] : memref<32x64xbf16, #tpu.memory_space<vmem>>, vector<32x64xbf16>
    %c0_1 = arith.constant 0 : index
    %c0_2 = arith.constant 0 : index
    %1 = vector.load %arg4[%c0_1, %c0_2] : memref<1x64xf32, #tpu.memory_space<vmem>>, vector<1x64xf32>
    %c0_3 = arith.constant 0 : index
    %c0_4 = arith.constant 0 : index
    %2 = vector.load %arg5[%c0_3, %c0_4] : memref<64x32xbf16, #tpu.memory_space<vmem>>, vector<64x32xbf16>
    %c0_5 = arith.constant 0 : index
    %c0_6 = arith.constant 0 : index
    %3 = vector.load %arg6[%c0_5, %c0_6] : memref<1x32xf32, #tpu.memory_space<vmem>>, vector<1x32xf32>
    %c0_7 = arith.constant 0 : index
    %c0_8 = arith.constant 0 : index
    %4 = vector.load %arg7[%c0_7, %c0_8] : memref<32x16xbf16, #tpu.memory_space<vmem>>, vector<32x16xbf16>
    %c0_9 = arith.constant 0 : index
    %c0_10 = arith.constant 0 : index
    %5 = vector.load %arg8[%c0_9, %c0_10] : memref<1x16xf32, #tpu.memory_space<vmem>>, vector<1x16xf32>
    %c0_11 = arith.constant 0 : index
    %6 = memref.load %arg1[%c0_11] : memref<2xf32, #tpu.memory_space<smem>>
    %c1 = arith.constant 1 : index
    %7 = memref.load %arg1[%c1] : memref<2xf32, #tpu.memory_space<smem>>
    %c0_12 = arith.constant 0 : index
    %c0_13 = arith.constant 0 : index
    %8 = vector.load %arg2[%c0_12, %c0_13] : memref<16x64xbf16, #tpu.memory_space<vmem>>, vector<16x32xbf16>
    %cst = arith.constant dense<0.000000e+00> : vector<16x64xf32>
    %9 = tpu.matmul %8, %0, %cst {dimension_numbers = #tpu.dot_dimension_numbers<[1], [0], [0], [1], [0, 0, 1, 1], [], []>} : vector<16x32xbf16>, vector<32x64xbf16>, vector<16x64xf32> -> vector<16x64xf32>
    %10 = vector.broadcast %1 : vector<1x64xf32> to vector<16x64xf32>
    %11 = arith.addf %9, %10 : vector<16x64xf32>
    %cst_14 = arith.constant 0.000000e+00 : f32
    %12 = vector.broadcast %cst_14 : f32 to vector<16x64xf32>
    %13 = arith.cmpf ogt, %11, %12 : vector<16x64xf32>
    %14 = vector.broadcast %6 : f32 to vector<16x64xf32>
    %15 = arith.mulf %14, %11 : vector<16x64xf32>
    %16 = arith.select %13, %11, %15 : vector<16x64xi1>, vector<16x64xf32>
    %17 = arith.truncf %16 : vector<16x64xf32> to vector<16x64xbf16>
    %cst_15 = arith.constant dense<0.000000e+00> : vector<16x32xf32>
    %18 = tpu.matmul %17, %2, %cst_15 {dimension_numbers = #tpu.dot_dimension_numbers<[1], [0], [0], [1], [0, 0, 1, 1], [], []>} : vector<16x64xbf16>, vector<64x32xbf16>, vector<16x32xf32> -> vector<16x32xf32>
    %19 = vector.broadcast %3 : vector<1x32xf32> to vector<16x32xf32>
    %20 = arith.addf %18, %19 : vector<16x32xf32>
    %cst_16 = arith.constant 0.000000e+00 : f32
    %21 = vector.broadcast %cst_16 : f32 to vector<16x32xf32>
    %22 = arith.cmpf ogt, %20, %21 : vector<16x32xf32>
    %23 = vector.broadcast %7 : f32 to vector<16x32xf32>
    %24 = arith.mulf %23, %20 : vector<16x32xf32>
    %25 = arith.select %22, %20, %24 : vector<16x32xi1>, vector<16x32xf32>
    %26 = arith.truncf %25 : vector<16x32xf32> to vector<16x32xbf16>
    %cst_17 = arith.constant dense<0.000000e+00> : vector<16x16xf32>
    %27 = tpu.matmul %26, %4, %cst_17 {dimension_numbers = #tpu.dot_dimension_numbers<[1], [0], [0], [1], [0, 0, 1, 1], [], []>} : vector<16x32xbf16>, vector<32x16xbf16>, vector<16x16xf32> -> vector<16x16xf32>
    %28 = vector.broadcast %5 : vector<1x16xf32> to vector<16x16xf32>
    %29 = arith.addf %27, %28 : vector<16x16xf32>
    %c0_18 = arith.constant 0 : index
    %c0_19 = arith.constant 0 : index
    %c0_20 = arith.constant 0 : index
    %30 = vector.load %arg9[%c0_18, %c0_19, %c0_20] : memref<2x16x16xf32, #tpu.memory_space<vmem>>, vector<1x16x16xf32>
    %31 = vector.shape_cast %30 : vector<1x16x16xf32> to vector<16x16xf32>
    %32 = vector.shape_cast %29 : vector<16x16xf32> to vector<1x16x16xf32>
    tpu.vector_store %arg9[%c0_18, %c0_19, %c0_20], %32 {strides = array<i32>} : memref<2x16x16xf32, #tpu.memory_space<vmem>>, vector<1x16x16xf32>,
    %c0_21 = arith.constant 0 : index
    %c32 = arith.constant 32 : index
    %33 = vector.load %arg2[%c0_21, %c32] : memref<16x64xbf16, #tpu.memory_space<vmem>>, vector<16x32xbf16>
    %cst_22 = arith.constant dense<0.000000e+00> : vector<16x64xf32>
    %34 = tpu.matmul %33, %0, %cst_22 {dimension_numbers = #tpu.dot_dimension_numbers<[1], [0], [0], [1], [0, 0, 1, 1], [], []>} : vector<16x32xbf16>, vector<32x64xbf16>, vector<16x64xf32> -> vector<16x64xf32>
    %35 = vector.broadcast %1 : vector<1x64xf32> to vector<16x64xf32>
    %36 = arith.addf %34, %35 : vector<16x64xf32>
    %cst_23 = arith.constant 0.000000e+00 : f32
    %37 = vector.broadcast %cst_23 : f32 to vector<16x64xf32>
    %38 = arith.cmpf ogt, %36, %37 : vector<16x64xf32>
    %39 = vector.broadcast %6 : f32 to vector<16x64xf32>
    %40 = arith.mulf %39, %36 : vector<16x64xf32>
    %41 = arith.select %38, %36, %40 : vector<16x64xi1>, vector<16x64xf32>
    %42 = arith.truncf %41 : vector<16x64xf32> to vector<16x64xbf16>
    %cst_24 = arith.constant dense<0.000000e+00> : vector<16x32xf32>
    %43 = tpu.matmul %42, %2, %cst_24 {dimension_numbers = #tpu.dot_dimension_numbers<[1], [0], [0], [1], [0, 0, 1, 1], [], []>} : vector<16x64xbf16>, vector<64x32xbf16>, vector<16x32xf32> -> vector<16x32xf32>
    %44 = vector.broadcast %3 : vector<1x32xf32> to vector<16x32xf32>
    %45 = arith.addf %43, %44 : vector<16x32xf32>
    %cst_25 = arith.constant 0.000000e+00 : f32
    %46 = vector.broadcast %cst_25 : f32 to vector<16x32xf32>
    %47 = arith.cmpf ogt, %45, %46 : vector<16x32xf32>
    %48 = vector.broadcast %7 : f32 to vector<16x32xf32>
    %49 = arith.mulf %48, %45 : vector<16x32xf32>
    %50 = arith.select %47, %45, %49 : vector<16x32xi1>, vector<16x32xf32>
    %51 = arith.truncf %50 : vector<16x32xf32> to vector<16x32xbf16>
    %cst_26 = arith.constant dense<0.000000e+00> : vector<16x16xf32>
    %52 = tpu.matmul %51, %4, %cst_26 {dimension_numbers = #tpu.dot_dimension_numbers<[1], [0], [0], [1], [0, 0, 1, 1], [], []>} : vector<16x32xbf16>, vector<32x16xbf16>, vector<16x16xf32> -> vector<16x16xf32>
    %53 = vector.broadcast %5 : vector<1x16xf32> to vector<16x16xf32>
    %54 = arith.addf %52, %53 : vector<16x16xf32>
    %c1_27 = arith.constant 1 : index
    %c0_28 = arith.constant 0 : index
    %c0_29 = arith.constant 0 : index
    %55 = vector.load %arg9[%c1_27, %c0_28, %c0_29] : memref<2x16x16xf32, #tpu.memory_space<vmem>>, vector<1x16x16xf32>
    %56 = vector.shape_cast %55 : vector<1x16x16xf32> to vector<16x16xf32>
    %57 = vector.shape_cast %54 : vector<16x16xf32> to vector<1x16x16xf32>
    tpu.vector_store %arg9[%c1_27, %c0_28, %c0_29], %57 {strides = array<i32>} : memref<2x16x16xf32, #tpu.memory_space<vmem>>, vector<1x16x16xf32>,
    return
  }
  func.func @transform_0(%arg0: i32) -> i32 {
    %c0_i32 = arith.constant 0 : i32
    %c0_i32_0 = arith.constant 0 : i32
    return %c0_i32 : i32
  }
  func.func @transform_1(%arg0: i32) -> (i32, i32) {
    %c0_i32 = arith.constant 0 : i32
    %c0_i32_0 = arith.constant 0 : i32
    return %arg0, %c0_i32 : i32, i32
  }
  func.func @transform_2(%arg0: i32) -> (i32, i32) {
    %c0_i32 = arith.constant 0 : i32
    %c0_i32_0 = arith.constant 0 : i32
    %c0_i32_1 = arith.constant 0 : i32
    return %c0_i32, %c0_i32_0 : i32, i32
  }
  func.func @transform_3(%arg0: i32) -> (i32, i32) {
    %c0_i32 = arith.constant 0 : i32
    %c0_i32_0 = arith.constant 0 : i32
    %c0_i32_1 = arith.constant 0 : i32
    return %c0_i32, %c0_i32_0 : i32, i32
  }
  func.func @transform_4(%arg0: i32) -> (i32, i32) {
    %c0_i32 = arith.constant 0 : i32
    %c0_i32_0 = arith.constant 0 : i32
    %c0_i32_1 = arith.constant 0 : i32
    return %c0_i32, %c0_i32_0 : i32, i32
  }
  func.func @transform_5(%arg0: i32) -> (i32, i32) {
    %c0_i32 = arith.constant 0 : i32
    %c0_i32_0 = arith.constant 0 : i32
    %c0_i32_1 = arith.constant 0 : i32
    return %c0_i32, %c0_i32_0 : i32, i32
  }
  func.func @transform_6(%arg0: i32) -> (i32, i32) {
    %c0_i32 = arith.constant 0 : i32
    %c0_i32_0 = arith.constant 0 : i32
    %c0_i32_1 = arith.constant 0 : i32
    return %c0_i32, %c0_i32_0 : i32, i32
  }
  func.func @transform_7(%arg0: i32) -> (i32, i32) {
    %c0_i32 = arith.constant 0 : i32
    %c0_i32_0 = arith.constant 0 : i32
    %c0_i32_1 = arith.constant 0 : i32
    return %c0_i32, %c0_i32_0 : i32, i32
  }
  func.func @transform_8(%arg0: i32) -> (i32, i32, i32) {
    %c0_i32 = arith.constant 0 : i32
    %c0_i32_0 = arith.constant 0 : i32
    %c0_i32_1 = arith.constant 0 : i32
    return %c0_i32, %arg0, %c0_i32_0 : i32, i32, i32
  }
}

</mosaic_0001>

<bundles_post_ra>
// kernel: tpu_custom_call.1
= control target key start
LH: loop header
LB: loop body
LE: loop exit
PB: predicated region body
PF: predicated region fallthrough
CT: control target
= control target key end

     0   :  { %13 = vsyncpa [#allocation4], 0  ;;  %s783_s0 = inlined_call_operand.vmem [shape: f32[2], index: 0, kind: input, shape index: {}]   ;;  %s784_s1 = inlined_call_operand.vmem [shape: bf16[16,64], index: 1, kind: input, shape index: {}]   ;;  %s785_s2 = inlined_call_operand.vmem [shape: bf16[32,64], index: 2, kind: input, shape index: {}]   ;;  %s786_s3 = inlined_call_operand.vmem [shape: f32[1,64], index: 3, kind: input, shape index: {}]   ;;  %s787_s4 = inlined_call_operand.vmem [shape: bf16[64,32], index: 4, kind: input, shape index: {}]   ;;  %s788_s5 = inlined_call_operand.vmem [shape: f32[1,32], index: 5, kind: input, shape index: {}]   ;;  %s789_s6 = inlined_call_operand.vmem [shape: bf16[32,16], index: 6, kind: input, shape index: {}]   ;;  %s790_s7 = inlined_call_operand.vmem [shape: f32[1,16], index: 7, kind: input, shape index: {}]   ;;  %s791_s8 = inlined_call_operand.hbm [shape: f32[2,16,16], index: 8, kind: output, shape index: {}]  }
   0x1   :  { %14 = vsyncpa [#allocation3], 0  ;;  %s21_s29 = sshll.u32 %s783_s0, 4  ;;  %s22_s29 = int_to_ptr.vmem [resolvable:$true] %s21_s29 }
   0x2   :  { %s581_s30 = scalar_lea.vmem %s22_s29, 16  ;;  %p586_p1 = scmp.lt.s32.totalorder %s22_s29, %s22_s29 }
   0x3   :  { %p582_p0 = scmp.ne.s32.totalorder %s22_s29, %s581_s30  ;;  %p587_p2 = scmp.lt.s32.totalorder %s581_s30, %s581_s30 }
   0x5   :  { %p588_p3 = por %p587_p2, %p586_p1 }
   0x7   :  { %p589_p4 = pnand %p588_p3, %p582_p0 }
   0x9   :  { %592 = shalt.err (!%p589_p4)
}
   0xa   :  { %s619_s9 = smov [#allocation2]  }
   0xb   :  { %24 = dma.vmem_to_smem %s22_s29, 16, %s619_s9, [#allocation4]  }
   0xc   :  { %615 = dma.done.wait [#allocation4], 16  }
   0xd   :  { %616 = vsyncadd [#allocation4], 4294967280 }
   0xe   :  { %42 = sfence }
   0xf   :  { %v677_v0 = vld [vmem:[%s785_s2] sm:$0xff]   ;;  %v620_v1 = vmov 0.0   ;;  %v685_v2 = vld [vmem:[%s785_s2 + $0x8] sm:$0xff]   ;;  %vm621_vm0 = vmmov 0   ;;  %vm90_vm1 = vcmask 261120   ;;  %v576_v6 = vld [vmem:[%s787_s4 + $0x10] sm:$0xff]  }
  0x10   :  { %508 = vmatprep.subr.bf16.mxu0 %v620_v1  ;;  %516 = vmatprep.subr.bf16.mxu1 %v620_v1  ;;  %v574_v3 = vld [vmem:[%s787_s4] sm:$0xff]   ;;  %v575_v5 = vld [vmem:[%s787_s4 + $0x8] sm:$0xff]   ;;  %v577_v7 = vld [vmem:[%s787_s4 + $0x18] sm:$0xff]   ;;  %s622_s24 = smov 96   ;;  %s63_s25 = sld [smem:[#allocation2]]  ;;  %vm173_vm4 = vcmask 523264  }
  0x11   :  { %509 = vmatpush3.bf16.msra.mxu0 %v677_v0  ;;  %512 = vmatprep.mubr.msk.bf16.mxu0 %vm621_vm0, %v620_v1  ;;  %v573_v4 = vld [vmem:[%s784_s1] sm:$0xff]   ;;  %v580_v23 = vld [vmem:[%s789_s6 + $0x8] sm:$0xff]   ;;  %s466_s29 = sld [smem:[#allocation2 + $0x1]]  ;;  %vm288_vm7 = vcmask 130048  }
  0x12   :  { %510 = vmatprep.subr.bf16.mxu0 %v620_v1  ;;  %524 = vmatprep.mubr.msk.bf16.mxu1 %vm621_vm0, %v620_v1  ;;  %v578_v8 = vld [vmem:[%s784_s1] sm:$0xff]  }
  0x13   :  { %517 = vmatpush3.bf16.msra.mxu1 %v574_v3  ;;  %298 = vrot.lane.b32.xlu0 %v578_v8, %s622_s24  ;;  %v722_v9 = vld [vmem:[%s786_s3] ss:$0 sm:$0xff] }
  0x14   :  { %518 = vmatprep.subr.bf16.mxu1 %v620_v1  ;;  %v579_v22 = vld [vmem:[%s789_s6] sm:$0xff]  }
  0x15   :  { %511 = vmatpush3.bf16.msra.mxu0 %v685_v2  ;;  %v472_v24 = vld [vmem:[%s788_s5] ss:$0 sm:$0xff] }
  0x16   :  { %528 = vmatprep.subr.bf16.mxu0 %v620_v1  ;;  %v724_v11 = vstv %s63_s25  ;;  %v478_v38 = vld [vmem:[%s790_s7] ss:$0 sm:$0xff]  ;;  %s623_s7 = smov [#allocation5]  }
  0x17   :  { %519 = vmatpush3.bf16.msra.mxu1 %v575_v5  ;;  %v220_v26 = vstv %s466_s29  ;;  %s454_s10 = sshll.u32 %s623_s7, 4  ;;  %s455_s10 = int_to_ptr.vmem [resolvable:$true] %s454_s10 }
  0x18   :  { %513 = vmatmul.mubr.msk.bf16.vlgmr.msra.gmra.mrb[0].mxu0 %vm90_vm1, %v573_v4  ;;  %520 = vmatprep.subr.bf16.mxu1 %v620_v1  ;;  %s593_s11 = scalar_lea.vmem %s455_s10, 512  ;;  %p598_p6 = scmp.lt.s32.totalorder %s455_s10, %s455_s10 }
  0x19   :  { %532 = vmatprep.mubr.msk.bf16.mxu0 %vm621_vm0, %v620_v1  ;;  %529 = vmatpush3.bf16.msra.mxu0 %v579_v22  ;;  %p594_p5 = scmp.ne.s32.totalorder %s455_s10, %s593_s11  ;;  %p599_p7 = scmp.lt.s32.totalorder %s593_s11, %s593_s11 }
  0x1a   :  { %530 = vmatprep.subr.bf16.mxu0 %v620_v1 }
  0x1b   :  { %521 = vmatpush3.bf16.msra.mxu1 %v576_v6  ;;  %p600_p8 = por %p599_p7, %p598_p6 }
  0x1c   :  { %522 = vmatprep.subr.bf16.mxu1 %v620_v1 }
  0x1d   :  { %531 = vmatpush3.bf16.msra.mxu0 %v580_v23  ;;  %p601_p9 = pnand %p600_p8, %p594_p5 }
  0x1e   :  { %536 = vmatprep.subr.bf16.mxu0 %v620_v1 }
  0x1f   :  { %523 = vmatpush3.bf16.msra.mxu1 %v577_v7 }
  0x20   :  { %544 = vmatprep.subr.bf16.mxu1 %v620_v1 }
  0x85   :  { %v299_v37 = vpop.permute.xlu0 %298 }
  0xeb   :  { %v128_v10 = vpop.f32.mrb[0].mxu0 }
  0xec   :  { %v129_v12 = vadd.f32 %v722_v9, %v128_v10  ;;  %v514_v13 = vpop.f32.mrb[1].mxu0 }
  0xed   :  { %v131_v14 = vpop.f32.mrb[2].mxu0 }
  0xee   :  { %v138_v15 = vmul.f32 %v724_v11, %v129_v12  ;;  %v132_v16 = vadd.f32 %v722_v9, %v131_v14  ;;  %v515_v17 = vpop.f32.mrb[3].mxu0  ;;  %vm135_vm2 = vcmp.gt.f32.partialorder %v129_v12, 0.0 }
  0xf0   :  { %vm136_vm3 = vcmp.gt.f32.partialorder %v132_v16, 0.0  ;;  %v139_v18 = vmul.f32 %v724_v11, %v132_v16  ;;  %v140_v19 = vsel %vm135_vm2, %v129_v12, %v138_v15 }
  0xf2   :  { %v141_v20 = vsel %vm136_vm3, %v132_v16, %v139_v18 }
  0xf3   :  { %v142_v21 = vpack.c.bf16 %v141_v20, %v140_v19 }
  0xf5   :  { %525 = vmatmul.mubr.msk.bf16.vlgmr.msra.gmra.mrb[0].mxu1 %vm173_vm4, %v142_v21 }
  0xf6   :  { %545 = vmatpush3.bf16.msra.mxu1 %v574_v3  ;;  %552 = vmatprep.mubr.msk.bf16.mxu1 %vm621_vm0, %v620_v1 }
  0xf7   :  { %546 = vmatprep.subr.bf16.mxu1 %v620_v1 }
  0xfa   :  { %547 = vmatpush3.bf16.msra.mxu1 %v575_v5 }
  0xfb   :  { %548 = vmatprep.subr.bf16.mxu1 %v620_v1 }
  0xfe   :  { %549 = vmatpush3.bf16.msra.mxu1 %v576_v6 }
  0xff   :  { %550 = vmatprep.subr.bf16.mxu1 %v620_v1 }
 0x102   :  { %551 = vmatpush3.bf16.msra.mxu1 %v577_v7 }
 0x1c8   :  { %v211_v25 = vpop.f32.mrb[0].mxu1 }
 0x1c9   :  { %v212_v27 = vadd.f32 %v472_v24, %v211_v25  ;;  %v526_v28 = vpop.f32.mrb[1].mxu1 }
 0x1ca   :  { %v214_v29 = vpop.f32.mrb[2].mxu1 }
 0x1cb   :  { %v221_v30 = vmul.f32 %v220_v26, %v212_v27  ;;  %v215_v31 = vadd.f32 %v472_v24, %v214_v29  ;;  %v527_v32 = vpop.f32.mrb[3].mxu1  ;;  %vm218_vm5 = vcmp.gt.f32.partialorder %v212_v27, 0.0 }
 0x1cd   :  { %vm219_vm6 = vcmp.gt.f32.partialorder %v215_v31, 0.0  ;;  %v222_v33 = vmul.f32 %v220_v26, %v215_v31  ;;  %v223_v34 = vsel %vm218_vm5, %v212_v27, %v221_v30 }
 0x1cf   :  { %v224_v35 = vsel %vm219_vm6, %v215_v31, %v222_v33 }
 0x1d0   :  { %v225_v36 = vpack.c.bf16 %v224_v35, %v223_v34 }
 0x1d2   :  { %533 = vmatmul.mubr.msk.bf16.vlgmr.msra.gmra.mrb[4].mxu0 %vm90_vm1, %v225_v36 }
 0x1d3   :  { %537 = vmatpush3.bf16.msra.mxu0 %v677_v0  ;;  %540 = vmatprep.mubr.msk.bf16.mxu0 %vm621_vm0, %v620_v1 }
 0x1d4   :  { %538 = vmatprep.subr.bf16.mxu0 %v620_v1 }
 0x1d7   :  { %539 = vmatpush3.bf16.msra.mxu0 %v685_v2 }
 0x1d8   :  { %556 = vmatprep.subr.bf16.mxu0 %v620_v1 }
 0x1da   :  { %541 = vmatmul.mubr.msk.bf16.vlgmr.msra.gmra.mrb[8].mxu0 %vm90_vm1, %v299_v37 }
 0x1db   :  { %557 = vmatpush3.bf16.msra.mxu0 %v579_v22  ;;  %560 = vmatprep.mubr.msk.bf16.mxu0 %vm621_vm0, %v620_v1 }
 0x1dc   :  { %558 = vmatprep.subr.bf16.mxu0 %v620_v1 }
 0x1df   :  { %559 = vmatpush3.bf16.msra.mxu0 %v580_v23 }
 0x2a5   :  { %v281_v39 = vpop.f32.mrb[4].mxu0 }
 0x2a6   :  { %v282_v40 = vadd.f32 %v478_v38, %v281_v39  ;;  %v534_v41 = vpop.f32.mrb[5].mxu0 }
 0x2a7   :  { %v284_v42 = vpop.f32.mrb[6].mxu0 }
 0x2a8   :  { %289 = vst.msk [vmem:[#allocation5] sm:$0xff] %vm288_vm7, %v282_v40  ;;  %v285_v43 = vadd.f32 %v478_v38, %v284_v42  ;;  %v535_v44 = vpop.f32.mrb[7].mxu0 }
 0x2aa   :  { %290 = vst.msk [vmem:[#allocation5 + $0x8] sm:$0xff] %vm288_vm7, %v285_v43 }
 0x2ad   :  { %v337_v45 = vpop.f32.mrb[8].mxu0 }
 0x2ae   :  { %v338_v46 = vadd.f32 %v722_v9, %v337_v45  ;;  %v542_v47 = vpop.f32.mrb[9].mxu0 }
 0x2af   :  { %v340_v48 = vpop.f32.mrb[10].mxu0 }
 0x2b0   :  { %v346_v49 = vmul.f32 %v338_v46, %v724_v11  ;;  %v341_v50 = vadd.f32 %v722_v9, %v340_v48  ;;  %v543_v51 = vpop.f32.mrb[11].mxu0  ;;  %vm344_vm8 = vcmp.gt.f32.partialorder %v338_v46, 0.0 }
 0x2b2   :  { %vm345_vm9 = vcmp.gt.f32.partialorder %v341_v50, 0.0  ;;  %v347_v52 = vmul.f32 %v341_v50, %v724_v11  ;;  %v348_v53 = vsel %vm344_vm8, %v338_v46, %v346_v49 }
 0x2b4   :  { %v349_v54 = vsel %vm345_vm9, %v341_v50, %v347_v52 }
 0x2b5   :  { %v350_v55 = vpack.c.bf16 %v349_v54, %v348_v53 }
 0x2b7   :  { %553 = vmatmul.mubr.msk.bf16.vlgmr.msra.gmra.mrb[4].mxu1 %vm173_vm4, %v350_v55 }
 0x38a   :  { %v388_v56 = vpop.f32.mrb[4].mxu1 }
 0x38b   :  { %v389_v57 = vadd.f32 %v472_v24, %v388_v56  ;;  %v554_v58 = vpop.f32.mrb[5].mxu1 }
 0x38c   :  { %v391_v59 = vpop.f32.mrb[6].mxu1 }
 0x38d   :  { %v397_v60 = vmul.f32 %v389_v57, %v220_v26  ;;  %v392_v61 = vadd.f32 %v472_v24, %v391_v59  ;;  %v555_v62 = vpop.f32.mrb[7].mxu1  ;;  %vm395_vm10 = vcmp.gt.f32.partialorder %v389_v57, 0.0 }
 0x38f   :  { %vm396_vm11 = vcmp.gt.f32.partialorder %v392_v61, 0.0  ;;  %v398_v63 = vmul.f32 %v392_v61, %v220_v26  ;;  %v399_v0 = vsel %vm395_vm10, %v389_v57, %v397_v60 }
 0x391   :  { %v400_v1 = vsel %vm396_vm11, %v392_v61, %v398_v63 }
 0x392   :  { %v401_v2 = vpack.c.bf16 %v400_v1, %v399_v0 }
 0x394   :  { %561 = vmatmul.mubr.msk.bf16.vlgmr.msra.gmra.mrb[12].mxu0 %vm90_vm1, %v401_v2 }
 0x467   :  { %v439_v3 = vpop.f32.mrb[12].mxu0 }
 0x468   :  { %v440_v4 = vadd.f32 %v478_v38, %v439_v3  ;;  %v562_v5 = vpop.f32.mrb[13].mxu0 }
 0x469   :  { %v442_v6 = vpop.f32.mrb[14].mxu0 }
 0x46a   :  { %447 = vst.msk [vmem:[#allocation5 + $0x10] sm:$0xff] %vm288_vm7, %v440_v4  ;;  %v443_v7 = vadd.f32 %v478_v38, %v442_v6  ;;  %v563_v8 = vpop.f32.mrb[15].mxu0 }
 0x46c   :  { %448 = vst.msk [vmem:[#allocation5 + $0x18] sm:$0xff] %vm288_vm7, %v443_v7 }
 0x46d   :  { %604 = shalt.err (!%p601_p9)
}
 0x46e   :  { %s605_s13 = scalar_lea.hbm %s791_s8, 512 }
 0x46f   :  { %p606_p10 = scmp.ne.s32.totalorder %s791_s8, %s605_s13  ;;  %p609_p11 = scmp.lt.u32.totalorder %s605_s13, %s791_s8 }
 0x471   :  { %p611_p12 = pnand %p609_p11, %p606_p10 }
 0x473   :  { %614 = shalt.err (!%p611_p12)
}
 0x474   :  { %s624_s17 = smov 128   ;;  %s625_s18 = smov 8  }
 0x475   :  { %460 = dma.vmem_to_hbm [thread:$0]  %s455_s10, 512, %s791_s8, [#allocation3], %s624_s17, %s624_s17, %s625_s18  }
 0x476   :  { %617 = dma.done.wait [#allocation3], 512  }
 0x477   :  { %618 = vsyncadd [#allocation3], 4294966784 }
 0x478   :  { %464 = vsyncpa [#allocation3], 1 }
 0x479   :  { %465 = vsyncpa [#allocation4], 1 }

</bundles_post_ra>
